<compile_context>
chip_gen: v5e
topology: v5e:2x2
jax: 0.10.0
libtpu: 0.0.40
codegen_flags: <defaults>
</compile_context>

<pallas_src>
import functools
import math

import jax
import jax.numpy as jnp
from jax.experimental import pallas as pl
from jax.experimental.pallas import tpu as pltpu

LANE = 128                 # lane-pad narrow Cout so output stores are dense
TM_MAX = 512               # v7x-safe row tile (64 MiB VMEM); v5e/v6e could use 1024
TILE_BYTE_BUDGET = 4 << 20  # per-buffer budget for the patches tile


def _round_up(x, m):
    return ((x + m - 1) // m) * m


def _choose_row_tile(rows, cols, itemsize):
    """Pick a row tile: multiple of 8, capped by VMEM budget and TM_MAX."""
    tm = TILE_BYTE_BUDGET // max(cols * itemsize, 1)
    tm = max(8, min(TM_MAX, (tm // 8) * 8))
    return min(tm, _round_up(rows, 8))


# --------------------------------------------------------------------------
# Pallas kernels
# --------------------------------------------------------------------------

def _conv_mm_kernel(p_ref, w_ref, o_ref, s_ref, *, negative_slope, apply_act,
                    collect_stats):
    """One row tile of conv-as-matmul: (TM,K)bf16 @ (K,NPAD)bf16 -> f32.

    Optionally fuses LeakyReLU (initial layer) and emits per-tile partial
    BatchNorm statistics (row-sum and row-sum-of-squares of the
    pre-activation output) so BN never re-reads the conv output for stats.
    """
    acc = jnp.dot(p_ref[...], w_ref[...], preferred_element_type=jnp.float32)
    if collect_stats:
        s0 = jnp.sum(acc, axis=0, keepdims=True)
        s1 = jnp.sum(acc * acc, axis=0, keepdims=True)
        s_ref[...] = jnp.concatenate([s0, s1], axis=0)[None]
    else:
        s_ref[...] = jnp.zeros_like(s_ref)
    if apply_act:
        acc = jnp.where(acc > 0, acc, negative_slope * acc)
    o_ref[...] = acc.astype(o_ref.dtype)


def conv_matmul(patches, wmat, *, apply_act, collect_stats, negative_slope=0.2):
    """Row-tiled conv matmul. Returns (padded_out (R_pad,NPAD), per-tile stats, tm)."""
    R, K = patches.shape
    _, cout = wmat.shape
    npad = _round_up(cout, LANE)

    tm = _choose_row_tile(R, K, 2)          # patches fed as bf16
    r_pad = _round_up(R, tm)
    n_tiles = r_pad // tm

    p = jnp.pad(patches, ((0, r_pad - R), (0, 0))).astype(jnp.bfloat16)
    w = jnp.pad(wmat, ((0, 0), (0, npad - cout))).astype(jnp.bfloat16)

    # 2 buffers per operand (auto double-buffering) + headroom; v7x-safe cap.
    vmem = (2 * tm * K * 2 + 2 * K * npad * 2 + 2 * tm * npad * 4
            + 2 * 2 * npad * 4 + (4 << 20))
    vmem = int(min(max(vmem, 16 << 20), 48 << 20))

    out, stats = pl.pallas_call(
        functools.partial(_conv_mm_kernel, negative_slope=negative_slope,
                          apply_act=apply_act, collect_stats=collect_stats),
        out_shape=(jax.ShapeDtypeStruct((r_pad, npad), jnp.float32),
                   jax.ShapeDtypeStruct((n_tiles, 2, npad), jnp.float32)),
        grid=(n_tiles,),
        in_specs=[pl.BlockSpec((tm, K), lambda i: (i, 0)),
                  pl.BlockSpec((K, npad), lambda i: (0, 0))],   # weight resident
        out_specs=(pl.BlockSpec((tm, npad), lambda i: (i, 0)),
                   pl.BlockSpec((1, 2, npad), lambda i: (i, 0, 0))),
        compiler_params=pltpu.CompilerParams(
            dimension_semantics=("parallel",),
            vmem_limit_bytes=vmem),
    )(p, w)
    return out, stats, tm


def _bn_leaky_kernel(y_ref, ss_ref, o_ref, *, negative_slope):
    # y: (TM, NPAD) conv output, ss: (2, NPAD) = [scale, shift]
    z = y_ref[...] * ss_ref[0:1, :] + ss_ref[1:2, :]
    o_ref[...] = jnp.where(z > 0, z, negative_slope * z)


def bn_leaky_apply(y_pad, scale_shift, tm, *, negative_slope=0.2):
    r_pad, npad = y_pad.shape
    n_tiles = r_pad // tm
    return pl.pallas_call(
        functools.partial(_bn_leaky_kernel, negative_slope=negative_slope),
        out_shape=jax.ShapeDtypeStruct((r_pad, npad), jnp.float32),
        grid=(n_tiles,),
        in_specs=[pl.BlockSpec((tm, npad), lambda i: (i, 0)),
                  pl.BlockSpec((2, npad), lambda i: (0, 0))],
        out_specs=pl.BlockSpec((tm, npad), lambda i: (i, 0)),
        compiler_params=pltpu.CompilerParams(dimension_semantics=("parallel",)),
    )(y_pad, scale_shift)


def _bn_scale_shift(stats, count, eps=1e-5):
    """Tiny XLA reduce of per-tile partial stats -> per-channel (scale, shift)."""
    sums = jnp.sum(stats, axis=0)                       # (2, NPAD)
    mean = sums[0] / count
    var = jnp.maximum(sums[1] / count - mean * mean, 0.0)   # biased, like PyTorch
    scale = jax.lax.rsqrt(var + eps)                    # gamma=1, beta=0 (fresh module)
    return jnp.stack([scale, -mean * scale], axis=0)    # (2, NPAD)


def _final_fm_kernel(p_ref, w_ref, u_ref, c_ref, o_ref, *, reg, q,
                     num_random_samples):
    # Fused final conv (B,Kf)@(Kf,k) and Gaussian random-feature map.
    x = jnp.dot(p_ref[...], w_ref[...], preferred_element_type=jnp.float32)  # (TB, k)
    u = u_ref[...]                                                           # (M, k)
    xu = jax.lax.dot_general(x, u, (((1,), (1,)), ((), ())),
                             preferred_element_type=jnp.float32)             # (TB, M)
    x2 = jnp.sum(x * x, axis=1, keepdims=True)                               # (TB, 1)
    ones = jnp.ones((1, u.shape[1]), jnp.float32)
    u2 = jax.lax.dot_general(ones, u * u, (((1,), (1,)), ((), ())),
                             preferred_element_type=jnp.float32)             # (1, M)
    sed = x2 - 2.0 * xu + u2                              # squared Euclidean dist
    expo = u2 * (1.0 / (reg * q)) - sed * (2.0 / reg)     # V + W
    res = c_ref[...] * jnp.exp(expo) * (1.0 / math.sqrt(float(num_random_samples)))
    o_ref[...] = res.astype(o_ref.dtype)


def final_conv_feature_map(patches, wmat, u, c, *, reg, q):
    B, Kf = patches.shape
    M, k = u.shape
    tb = _choose_row_tile(B, Kf, 4)
    b_pad = _round_up(B, tb)
    n_tiles = b_pad // tb
    p = jnp.pad(patches, ((0, b_pad - B), (0, 0)))
    c_row = c.reshape(1, M)
    out = pl.pallas_call(
        functools.partial(_final_fm_kernel, reg=float(reg), q=float(q),
                          num_random_samples=M),
        out_shape=jax.ShapeDtypeStruct((b_pad, M), jnp.float32),
        grid=(n_tiles,),
        in_specs=[pl.BlockSpec((tb, Kf), lambda i: (i, 0)),
                  pl.BlockSpec((Kf, k), lambda i: (0, 0)),
                  pl.BlockSpec((M, k), lambda i: (0, 0)),
                  pl.BlockSpec((1, M), lambda i: (0, 0))],
        out_specs=pl.BlockSpec((tb, M), lambda i: (i, 0)),
        compiler_params=pltpu.CompilerParams(dimension_semantics=("parallel",)),
    )(p, wmat, u, c_row)
    return out[:B]


# --------------------------------------------------------------------------
# JAX glue: im2col + module wrapper
# --------------------------------------------------------------------------

def im2col(x_nhwc, kh, kw, stride, pad):
    """x: (B, H, W, C) -> patches (B*OH*OW, KH*KW*C), ordering (i*KW+j)*C + c."""
    x = jnp.pad(x_nhwc, ((0, 0), (pad, pad), (pad, pad), (0, 0)))
    B, H, W, C = x.shape
    oh = (H - kh) // stride + 1
    ow = (W - kw) // stride + 1
    cols = []
    for i in range(kh):
        for j in range(kw):
            cols.append(x[:, i:i + stride * oh:stride, j:j + stride * ow:stride, :])
    patches = jnp.stack(cols, axis=-2)                 # (B, oh, ow, kh*kw, C)
    return patches.reshape(B * oh * ow, kh * kw * C), oh, ow


def conv_weight_to_mat(w_oihw):
    """PyTorch (Cout, Cin, KH, KW) -> (KH*KW*Cin, Cout) matching im2col ordering."""
    cout, cin, kh, kw = w_oihw.shape
    return jnp.transpose(w_oihw, (2, 3, 1, 0)).reshape(kh * kw * cin, cout)


class EmbeddingPallas:
    def __init__(self, isize, nc, reg, q, C, U_init,
                 k=16, num_random_samples=32, ndf=8, seed=49):
        assert isize % 16 == 0, 'isize has to be a multiple of 16'
        key = jax.random.PRNGKey(seed)

        self.conv_weights = []      # list of (weight_OIHW, kind) for k4 s2 p1 convs
        key, sub = jax.random.split(key)
        self.conv_weights.append(
            (0.02 * jax.random.normal(sub, (ndf, nc, 4, 4), jnp.float32), 'initial'))

        csize, cndf = isize // 2, ndf
        while csize > 4:
            in_feat, out_feat = cndf, cndf * 2
            key, sub = jax.random.split(key)
            self.conv_weights.append(
                (0.02 * jax.random.normal(sub, (out_feat, in_feat, 4, 4), jnp.float32),
                 'pyramid'))
            cndf, csize = cndf * 2, csize // 2

        key, sub = jax.random.split(key)
        self.final_w = 0.02 * jax.random.normal(sub, (k, cndf, 4, 4), jnp.float32)

        self.U = jnp.asarray(U_init, jnp.float32)          # (M, k)
        self.C = jnp.asarray(C, jnp.float32)               # (M,)
        self.q = float(q)
        self.reg = float(reg)
        self.num_random_samples = num_random_samples
        self.k = k
        self._fwd = jax.jit(self._forward)

    def _forward(self, x_nchw):
        # layout: input is NCHW (PyTorch convention); run convs in NHWC.
        x = jnp.transpose(x_nchw.astype(jnp.float32), (0, 2, 3, 1))
        B = x.shape[0]

        for w, kind in self.conv_weights:
            cout = w.shape[0]
            patches, oh, ow = im2col(x, 4, 4, 2, 1)
            R = patches.shape[0]
            wmat = conv_weight_to_mat(w)
            y_pad, stats, tm = conv_matmul(
                patches, wmat,
                apply_act=(kind == 'initial'),       # conv + LeakyReLU fused
                collect_stats=(kind == 'pyramid'))   # conv + fused BN statistics
            if kind == 'pyramid':
                ss = _bn_scale_shift(stats, R)               # (2, NPAD), tiny
                y_pad = bn_leaky_apply(y_pad, ss, tm)        # normalize + LeakyReLU
            x = y_pad[:R, :cout].reshape(B, oh, ow, cout)

        # final 4x4 valid conv -> (B, k), fused with the Gaussian feature map
        patches_f, _, _ = im2col(x, 4, 4, 1, 0)              # (B, 16*cndf)
        wmat_f = conv_weight_to_mat(self.final_w)            # (16*cndf, k)
        res = final_conv_feature_map(patches_f, wmat_f, self.U, self.C,
                                     reg=self.reg, q=self.q)
        return res.reshape(B, self.num_random_samples, 1, 1)

    def __call__(self, x_nchw):
        return self._fwd(jnp.asarray(x_nchw, jnp.float32))


# --------------------------------------------------------------------------
# Main
# --------------------------------------------------------------------------

if __name__ == "__main__":
    key = jax.random.PRNGKey(0)
    B, nc, isize = 2, 4, 16
    k, M, ndf = 16, 32, 8

    kx, ku, kc = jax.random.split(key, 3)
    x = jax.random.normal(kx, (B, nc, isize, isize), jnp.float32)
    U_init = jax.random.normal(ku, (M, k), jnp.float32)
    C = jax.random.uniform(kc, (M,), jnp.float32, 0.5, 1.5)

    model = EmbeddingPallas(isize=isize, nc=nc, reg=10.0, q=2.0, C=C, U_init=U_init,
                            k=k, num_random_samples=M, ndf=ndf, seed=49)

    out = model(x)
    out = jax.block_until_ready(out)
    assert out.shape == (B, M, 1, 1), out.shape
    assert jnp.all(jnp.isfinite(out))
    print("KERNEL_OK")
</pallas_src>

<mosaic_0001>
module attributes {stable_mosaic.version = 11 : i64} {
  func.func @_conv_mm_kernel(%arg0: i32, %arg1: memref<128x64xbf16, #tpu.memory_space<vmem>>, %arg2: memref<64x128xbf16, #tpu.memory_space<vmem>>, %arg3: memref<128x128xf32, #tpu.memory_space<vmem>>, %arg4: memref<1x2x128xf32, #tpu.memory_space<vmem>>) attributes {dimension_semantics = [#tpu.dimension_semantics<parallel>], iteration_bounds = array<i64: 1>, scalar_prefetch = 0 : i64, scratch_operands = 0 : i64, tpu.core_type = #tpu.core_type<tc>, window_params = [{transform_indices = @transform_0, window_bounds = array<i64: 128, 64>}, {pipeline_mode = #tpu.pipeline_mode<synchronous>, transform_indices = @transform_1, window_bounds = array<i64: 64, 128>}, {transform_indices = @transform_2, window_bounds = array<i64: 128, 128>}, {transform_indices = @transform_3, window_bounds = array<i64: 1, 2, 128>}]} {
    %c0 = arith.constant 0 : index
    %c0_0 = arith.constant 0 : index
    %0 = vector.load %arg1[%c0, %c0_0] : memref<128x64xbf16, #tpu.memory_space<vmem>>, vector<128x64xbf16>
    %c0_1 = arith.constant 0 : index
    %c0_2 = arith.constant 0 : index
    %1 = vector.load %arg2[%c0_1, %c0_2] : memref<64x128xbf16, #tpu.memory_space<vmem>>, vector<64x128xbf16>
    %cst = arith.constant dense<0.000000e+00> : vector<128x128xf32>
    %2 = tpu.matmul %0, %1, %cst {dimension_numbers = #tpu.dot_dimension_numbers<[1], [0], [0], [1], [0, 0, 1, 1], [], []>} : vector<128x64xbf16>, vector<64x128xbf16>, vector<128x128xf32> -> vector<128x128xf32>
    %cst_3 = arith.constant 0.000000e+00 : f32
    %3 = vector.broadcast %cst_3 : f32 to vector<1x2x128xf32>
    %c0_4 = arith.constant 0 : index
    %c0_5 = arith.constant 0 : index
    %c0_6 = arith.constant 0 : index
    %4 = vector.load %arg4[%c0_4, %c0_5, %c0_6] : memref<1x2x128xf32, #tpu.memory_space<vmem>>, vector<1x2x128xf32>
    tpu.vector_store %arg4[%c0_4, %c0_5, %c0_6], %3 {strides = array<i32>} : memref<1x2x128xf32, #tpu.memory_space<vmem>>, vector<1x2x128xf32>,
    %cst_7 = arith.constant 0.000000e+00 : f32
    %5 = vector.broadcast %cst_7 : f32 to vector<128x128xf32>
    %6 = arith.cmpf ogt, %2, %5 : vector<128x128xf32>
    %cst_8 = arith.constant 2.000000e-01 : f32
    %7 = vector.broadcast %cst_8 : f32 to vector<128x128xf32>
    %8 = arith.mulf %7, %2 : vector<128x128xf32>
    %9 = arith.select %6, %2, %8 : vector<128x128xi1>, vector<128x128xf32>
    %c0_9 = arith.constant 0 : index
    %c0_10 = arith.constant 0 : index
    %10 = vector.load %arg3[%c0_9, %c0_10] : memref<128x128xf32, #tpu.memory_space<vmem>>, vector<128x128xf32>
    tpu.vector_store %arg3[%c0_9, %c0_10], %9 {strides = array<i32>} : memref<128x128xf32, #tpu.memory_space<vmem>>, vector<128x128xf32>,
    return
  }
  func.func @transform_0(%arg0: i32) -> (i32, i32) {
    %c0_i32 = arith.constant 0 : i32
    %c0_i32_0 = arith.constant 0 : i32
    return %arg0, %c0_i32 : i32, i32
  }
  func.func @transform_1(%arg0: i32) -> (i32, i32) {
    %c0_i32 = arith.constant 0 : i32
    %c0_i32_0 = arith.constant 0 : i32
    %c0_i32_1 = arith.constant 0 : i32
    return %c0_i32, %c0_i32_0 : i32, i32
  }
  func.func @transform_2(%arg0: i32) -> (i32, i32) {
    %c0_i32 = arith.constant 0 : i32
    %c0_i32_0 = arith.constant 0 : i32
    return %arg0, %c0_i32 : i32, i32
  }
  func.func @transform_3(%arg0: i32) -> (i32, i32, i32) {
    %c0_i32 = arith.constant 0 : i32
    %c0_i32_0 = arith.constant 0 : i32
    %c0_i32_1 = arith.constant 0 : i32
    return %arg0, %c0_i32, %c0_i32_0 : i32, i32, i32
  }
}

module attributes {stable_mosaic.version = 11 : i64} {
  func.func @_conv_mm_kernel(%arg0: i32, %arg1: memref<32x128xbf16, #tpu.memory_space<vmem>>, %arg2: memref<128x128xbf16, #tpu.memory_space<vmem>>, %arg3: memref<32x128xf32, #tpu.memory_space<vmem>>, %arg4: memref<1x2x128xf32, #tpu.memory_space<vmem>>) attributes {dimension_semantics = [#tpu.dimension_semantics<parallel>], iteration_bounds = array<i64: 1>, scalar_prefetch = 0 : i64, scratch_operands = 0 : i64, tpu.core_type = #tpu.core_type<tc>, window_params = [{transform_indices = @transform_0, window_bounds = array<i64: 32, 128>}, {pipeline_mode = #tpu.pipeline_mode<synchronous>, transform_indices = @transform_1, window_bounds = array<i64: 128, 128>}, {transform_indices = @transform_2, window_bounds = array<i64: 32, 128>}, {transform_indices = @transform_3, window_bounds = array<i64: 1, 2, 128>}]} {
    %c0 = arith.constant 0 : index
    %c0_0 = arith.constant 0 : index
    %0 = vector.load %arg1[%c0, %c0_0] : memref<32x128xbf16, #tpu.memory_space<vmem>>, vector<32x128xbf16>
    %c0_1 = arith.constant 0 : index
    %c0_2 = arith.constant 0 : index
    %1 = vector.load %arg2[%c0_1, %c0_2] : memref<128x128xbf16, #tpu.memory_space<vmem>>, vector<128x128xbf16>
    %cst = arith.constant dense<0.000000e+00> : vector<32x128xf32>
    %2 = tpu.matmul %0, %1, %cst {dimension_numbers = #tpu.dot_dimension_numbers<[1], [0], [0], [1], [0, 0, 1, 1], [], []>} : vector<32x128xbf16>, vector<128x128xbf16>, vector<32x128xf32> -> vector<32x128xf32>
    %cst_3 = arith.constant dense<0.000000e+00> : vector<128xf32>
    %3 = vector.multi_reduction <add>, %2, %cst_3 [0] : vector<32x128xf32> to vector<128xf32>
    %4 = vector.shape_cast %3 : vector<128xf32> to vector<1x128xf32>
    %5 = arith.mulf %2, %2 : vector<32x128xf32>
    %cst_4 = arith.constant dense<0.000000e+00> : vector<128xf32>
    %6 = vector.multi_reduction <add>, %5, %cst_4 [0] : vector<32x128xf32> to vector<128xf32>
    %7 = vector.shape_cast %6 : vector<128xf32> to vector<1x128xf32>
    %8 = tpu.concatenate %4, %7 in 0 : vector<1x128xf32>, vector<1x128xf32> -> vector<2x128xf32>
    %9 = vector.shape_cast %8 : vector<2x128xf32> to vector<1x2x128xf32>
    %c0_5 = arith.constant 0 : index
    %c0_6 = arith.constant 0 : index
    %c0_7 = arith.constant 0 : index
    %10 = vector.load %arg4[%c0_5, %c0_6, %c0_7] : memref<1x2x128xf32, #tpu.memory_space<vmem>>, vector<1x2x128xf32>
    tpu.vector_store %arg4[%c0_5, %c0_6, %c0_7], %9 {strides = array<i32>} : memref<1x2x128xf32, #tpu.memory_space<vmem>>, vector<1x2x128xf32>,
    %c0_8 = arith.constant 0 : index
    %c0_9 = arith.constant 0 : index
    %11 = vector.load %arg3[%c0_8, %c0_9] : memref<32x128xf32, #tpu.memory_space<vmem>>, vector<32x128xf32>
    tpu.vector_store %arg3[%c0_8, %c0_9], %2 {strides = array<i32>} : memref<32x128xf32, #tpu.memory_space<vmem>>, vector<32x128xf32>,
    return
  }
  func.func @transform_0(%arg0: i32) -> (i32, i32) {
    %c0_i32 = arith.constant 0 : i32
    %c0_i32_0 = arith.constant 0 : i32
    return %arg0, %c0_i32 : i32, i32
  }
  func.func @transform_1(%arg0: i32) -> (i32, i32) {
    %c0_i32 = arith.constant 0 : i32
    %c0_i32_0 = arith.constant 0 : i32
    %c0_i32_1 = arith.constant 0 : i32
    return %c0_i32, %c0_i32_0 : i32, i32
  }
  func.func @transform_2(%arg0: i32) -> (i32, i32) {
    %c0_i32 = arith.constant 0 : i32
    %c0_i32_0 = arith.constant 0 : i32
    return %arg0, %c0_i32 : i32, i32
  }
  func.func @transform_3(%arg0: i32) -> (i32, i32, i32) {
    %c0_i32 = arith.constant 0 : i32
    %c0_i32_0 = arith.constant 0 : i32
    %c0_i32_1 = arith.constant 0 : i32
    return %arg0, %c0_i32, %c0_i32_0 : i32, i32, i32
  }
}

module attributes {stable_mosaic.version = 11 : i64} {
  func.func @_bn_leaky_kernel(%arg0: i32, %arg1: memref<32x128xf32, #tpu.memory_space<vmem>>, %arg2: memref<2x128xf32, #tpu.memory_space<vmem>>, %arg3: memref<32x128xf32, #tpu.memory_space<vmem>>) attributes {dimension_semantics = [#tpu.dimension_semantics<parallel>], iteration_bounds = array<i64: 1>, scalar_prefetch = 0 : i64, scratch_operands = 0 : i64, tpu.core_type = #tpu.core_type<tc>, window_params = [{transform_indices = @transform_0, window_bounds = array<i64: 32, 128>}, {pipeline_mode = #tpu.pipeline_mode<synchronous>, transform_indices = @transform_1, window_bounds = array<i64: 2, 128>}, {transform_indices = @transform_2, window_bounds = array<i64: 32, 128>}]} {
    %c0 = arith.constant 0 : index
    %c0_0 = arith.constant 0 : index
    %0 = vector.load %arg1[%c0, %c0_0] : memref<32x128xf32, #tpu.memory_space<vmem>>, vector<32x128xf32>
    %c0_1 = arith.constant 0 : index
    %c0_2 = arith.constant 0 : index
    %1 = vector.load %arg2[%c0_1, %c0_2] : memref<2x128xf32, #tpu.memory_space<vmem>>, vector<1x128xf32>
    %2 = vector.broadcast %1 : vector<1x128xf32> to vector<32x128xf32>
    %3 = arith.mulf %0, %2 : vector<32x128xf32>
    %c1 = arith.constant 1 : index
    %c0_3 = arith.constant 0 : index
    %4 = vector.load %arg2[%c1, %c0_3] : memref<2x128xf32, #tpu.memory_space<vmem>>, vector<1x128xf32>
    %5 = vector.broadcast %4 : vector<1x128xf32> to vector<32x128xf32>
    %6 = arith.addf %3, %5 : vector<32x128xf32>
    %cst = arith.constant 0.000000e+00 : f32
    %7 = vector.broadcast %cst : f32 to vector<32x128xf32>
    %8 = arith.cmpf ogt, %6, %7 : vector<32x128xf32>
    %cst_4 = arith.constant 2.000000e-01 : f32
    %9 = vector.broadcast %cst_4 : f32 to vector<32x128xf32>
    %10 = arith.mulf %9, %6 : vector<32x128xf32>
    %11 = arith.select %8, %6, %10 : vector<32x128xi1>, vector<32x128xf32>
    %c0_5 = arith.constant 0 : index
    %c0_6 = arith.constant 0 : index
    %12 = vector.load %arg3[%c0_5, %c0_6] : memref<32x128xf32, #tpu.memory_space<vmem>>, vector<32x128xf32>
    tpu.vector_store %arg3[%c0_5, %c0_6], %11 {strides = array<i32>} : memref<32x128xf32, #tpu.memory_space<vmem>>, vector<32x128xf32>,
    return
  }
  func.func @transform_0(%arg0: i32) -> (i32, i32) {
    %c0_i32 = arith.constant 0 : i32
    %c0_i32_0 = arith.constant 0 : i32
    return %arg0, %c0_i32 : i32, i32
  }
  func.func @transform_1(%arg0: i32) -> (i32, i32) {
    %c0_i32 = arith.constant 0 : i32
    %c0_i32_0 = arith.constant 0 : i32
    %c0_i32_1 = arith.constant 0 : i32
    return %c0_i32, %c0_i32_0 : i32, i32
  }
  func.func @transform_2(%arg0: i32) -> (i32, i32) {
    %c0_i32 = arith.constant 0 : i32
    %c0_i32_0 = arith.constant 0 : i32
    return %arg0, %c0_i32 : i32, i32
  }
}

module attributes {stable_mosaic.version = 11 : i64} {
  func.func @_final_fm_kernel(%arg0: i32, %arg1: memref<8x256xf32, #tpu.memory_space<vmem>>, %arg2: memref<256x16xf32, #tpu.memory_space<vmem>>, %arg3: memref<32x16xf32, #tpu.memory_space<vmem>>, %arg4: memref<1x32xf32, #tpu.memory_space<vmem>>, %arg5: memref<8x32xf32, #tpu.memory_space<vmem>>) attributes {dimension_semantics = [#tpu.dimension_semantics<parallel>], iteration_bounds = array<i64: 1>, scalar_prefetch = 0 : i64, scratch_operands = 0 : i64, tpu.core_type = #tpu.core_type<tc>, window_params = [{transform_indices = @transform_0, window_bounds = array<i64: 8, 256>}, {pipeline_mode = #tpu.pipeline_mode<synchronous>, transform_indices = @transform_1, window_bounds = array<i64: 256, 16>}, {pipeline_mode = #tpu.pipeline_mode<synchronous>, transform_indices = @transform_2, window_bounds = array<i64: 32, 16>}, {pipeline_mode = #tpu.pipeline_mode<synchronous>, transform_indices = @transform_3, window_bounds = array<i64: 1, 32>}, {transform_indices = @transform_4, window_bounds = array<i64: 8, 32>}]} {
    %c0 = arith.constant 0 : index
    %c0_0 = arith.constant 0 : index
    %0 = vector.load %arg1[%c0, %c0_0] : memref<8x256xf32, #tpu.memory_space<vmem>>, vector<8x256xf32>
    %c0_1 = arith.constant 0 : index
    %c0_2 = arith.constant 0 : index
    %1 = vector.load %arg2[%c0_1, %c0_2] : memref<256x16xf32, #tpu.memory_space<vmem>>, vector<256x16xf32>
    %cst = arith.constant dense<0.000000e+00> : vector<8x16xf32>
    %2 = tpu.matmul %0, %1, %cst {dimension_numbers = #tpu.dot_dimension_numbers<[1], [0], [0], [1], [0, 0, 1, 1], [], []>} : vector<8x256xf32>, vector<256x16xf32>, vector<8x16xf32> -> vector<8x16xf32>
    %c0_3 = arith.constant 0 : index
    %c0_4 = arith.constant 0 : index
    %3 = vector.load %arg3[%c0_3, %c0_4] : memref<32x16xf32, #tpu.memory_space<vmem>>, vector<32x16xf32>
    %cst_5 = arith.constant dense<0.000000e+00> : vector<8x32xf32>
    %4 = tpu.matmul %2, %3, %cst_5 {dimension_numbers = #tpu.dot_dimension_numbers<[1], [1], [0], [0], [0, 0, 1, 0], [], []>} : vector<8x16xf32>, vector<32x16xf32>, vector<8x32xf32> -> vector<8x32xf32>
    %5 = arith.mulf %2, %2 : vector<8x16xf32>
    %cst_6 = arith.constant dense<0.000000e+00> : vector<8xf32>
    %6 = vector.multi_reduction <add>, %5, %cst_6 [1] : vector<8x16xf32> to vector<8xf32>
    %7 = vector.shape_cast %6 : vector<8xf32> to vector<8x1xf32>
    %cst_7 = arith.constant 1.000000e+00 : f32
    %8 = vector.broadcast %cst_7 : f32 to vector<1x16xf32>
    %9 = arith.mulf %3, %3 : vector<32x16xf32>
    %cst_8 = arith.constant dense<0.000000e+00> : vector<1x32xf32>
    %10 = tpu.matmul %8, %9, %cst_8 {dimension_numbers = #tpu.dot_dimension_numbers<[1], [1], [0], [0], [0, 0, 1, 0], [], []>} : vector<1x16xf32>, vector<32x16xf32>, vector<1x32xf32> -> vector<1x32xf32>
    %cst_9 = arith.constant 2.000000e+00 : f32
    %11 = vector.broadcast %cst_9 : f32 to vector<8x32xf32>
    %12 = arith.mulf %11, %4 : vector<8x32xf32>
    %13 = vector.broadcast %7 : vector<8x1xf32> to vector<8x32xf32>
    %14 = arith.subf %13, %12 : vector<8x32xf32>
    %15 = vector.broadcast %10 : vector<1x32xf32> to vector<8x32xf32>
    %16 = arith.addf %14, %15 : vector<8x32xf32>
    %cst_10 = arith.constant 5.000000e-02 : f32
    %17 = vector.broadcast %cst_10 : f32 to vector<1x32xf32>
    %18 = arith.mulf %10, %17 : vector<1x32xf32>
    %cst_11 = arith.constant 2.000000e-01 : f32
    %19 = vector.broadcast %cst_11 : f32 to vector<8x32xf32>
    %20 = arith.mulf %16, %19 : vector<8x32xf32>
    %21 = vector.broadcast %18 : vector<1x32xf32> to vector<8x32xf32>
    %22 = arith.subf %21, %20 : vector<8x32xf32>
    %c0_12 = arith.constant 0 : index
    %c0_13 = arith.constant 0 : index
    %23 = vector.load %arg4[%c0_12, %c0_13] : memref<1x32xf32, #tpu.memory_space<vmem>>, vector<1x32xf32>
    %24 = math.exp %22 : vector<8x32xf32>
    %25 = vector.broadcast %23 : vector<1x32xf32> to vector<8x32xf32>
    %26 = arith.mulf %25, %24 : vector<8x32xf32>
    %cst_14 = arith.constant 0.176776692 : f32
    %27 = vector.broadcast %cst_14 : f32 to vector<8x32xf32>
    %28 = arith.mulf %26, %27 : vector<8x32xf32>
    %c0_15 = arith.constant 0 : index
    %c0_16 = arith.constant 0 : index
    %29 = vector.load %arg5[%c0_15, %c0_16] : memref<8x32xf32, #tpu.memory_space<vmem>>, vector<8x32xf32>
    tpu.vector_store %arg5[%c0_15, %c0_16], %28 {strides = array<i32>} : memref<8x32xf32, #tpu.memory_space<vmem>>, vector<8x32xf32>,
    return
  }
  func.func @transform_0(%arg0: i32) -> (i32, i32) {
    %c0_i32 = arith.constant 0 : i32
    %c0_i32_0 = arith.constant 0 : i32
    return %arg0, %c0_i32 : i32, i32
  }
  func.func @transform_1(%arg0: i32) -> (i32, i32) {
    %c0_i32 = arith.constant 0 : i32
    %c0_i32_0 = arith.constant 0 : i32
    %c0_i32_1 = arith.constant 0 : i32
    return %c0_i32, %c0_i32_0 : i32, i32
  }
  func.func @transform_2(%arg0: i32) -> (i32, i32) {
    %c0_i32 = arith.constant 0 : i32
    %c0_i32_0 = arith.constant 0 : i32
    %c0_i32_1 = arith.constant 0 : i32
    return %c0_i32, %c0_i32_0 : i32, i32
  }
  func.func @transform_3(%arg0: i32) -> (i32, i32) {
    %c0_i32 = arith.constant 0 : i32
    %c0_i32_0 = arith.constant 0 : i32
    %c0_i32_1 = arith.constant 0 : i32
    return %c0_i32, %c0_i32_0 : i32, i32
  }
  func.func @transform_4(%arg0: i32) -> (i32, i32) {
    %c0_i32 = arith.constant 0 : i32
    %c0_i32_0 = arith.constant 0 : i32
    return %arg0, %c0_i32 : i32, i32
  }
}

</mosaic_0001>

<bundles_post_ra>
// kernel: _forward.4
= control target key start
LH: loop header
LB: loop body
LE: loop exit
PB: predicated region body
PF: predicated region fallthrough
CT: control target
= control target key end

     0   :  { %s487_s0 = inlined_call_operand.vmem [shape: bf16[128,64], index: 0, kind: input, shape index: {}]   ;;  %s488_s1 = inlined_call_operand.vmem [shape: bf16[64,128], index: 1, kind: input, shape index: {}]   ;;  %s489_s2 = inlined_call_operand.vmem [shape: f32[128,128], index: 2, kind: output, shape index: {0}]   ;;  %s490_s3 = inlined_call_operand.hbm [shape: f32[1,2,128], index: 3, kind: output, shape index: {1}]  }
   0x1   :  { %v329_v0 = vld [vmem:[%s488_s1 + $0x18] sm:$0xff]  ;;  %v328_v1 = vld [vmem:[%s488_s1 + $0x10] sm:$0xff] }
   0x2   :  { %132 = vmatpush.bf16.msra.mxu0 %v329_v0  ;;  %330 = vmatpush.bf16.msra.mxu1 %v329_v0 }
   0x3   :  { %331 = vmatpush.bf16.msra.mxu2 %v329_v0  ;;  %332 = vmatpush.bf16.msra.mxu3 %v329_v0 }
   0x4   :  { %9 = vsyncpa [#allocation3], 0  ;;  %v327_v2 = vld [vmem:[%s488_s1 + $0x8] sm:$0xff]  ;;  %v326_v3 = vld [vmem:[%s488_s1] sm:$0xff]  ;;  %vm103_vm0 = vcmask 523264   ;;  %s370_s8 = smov [#allocation2]  }
   0x5   :  { %v318_v4 = vld [vmem:[%s487_s0] sm:$0xff]  ;;  %v320_v5 = vld [vmem:[%s487_s0 + $0x10] sm:$0xff]  ;;  %v319_v8 = vld [vmem:[%s487_s0 + $0x8] sm:$0xff]  ;;  %s249_s9 = sshll.u32 %s370_s8, 4  ;;  %s251_s12 = sshll.u32 %s490_s3, 4  ;;  %v371_v18 = vmov 0.0   ;;  %s250_s9 = int_to_ptr.vmem [resolvable:$true] %s249_s9  ;;  %s252_s12 = int_to_ptr.hbm [resolvable:$true] %s251_s12 }
   0x6   :  { %133 = vmatpush.bf16.msra.mxu0 %v328_v1  ;;  %333 = vmatpush.bf16.msra.mxu1 %v328_v1  ;;  %v322_v6 = vld [vmem:[%s487_s0 + $0x20] sm:$0xff]  ;;  %v324_v7 = vld [vmem:[%s487_s0 + $0x30] sm:$0xff]  ;;  %v321_v9 = vld [vmem:[%s487_s0 + $0x18] sm:$0xff]  ;;  %177 = vst [vmem:[#allocation2] sm:$0x3] %v371_v18 }
   0x7   :  { %334 = vmatpush.bf16.msra.mxu2 %v328_v1  ;;  %335 = vmatpush.bf16.msra.mxu3 %v328_v1  ;;  %v323_v10 = vld [vmem:[%s487_s0 + $0x28] sm:$0xff]  ;;  %v325_v11 = vld [vmem:[%s487_s0 + $0x38] sm:$0xff]  ;;  %254 = dma.vmem_to_hbm [thread:$0]  %s250_s9, 32, %s252_s12, [#allocation3]  }
   0xa   :  { %134 = vmatpush.bf16.msra.mxu0 %v327_v2  ;;  %336 = vmatpush.bf16.msra.mxu1 %v327_v2 }
   0xb   :  { %337 = vmatpush.bf16.msra.mxu2 %v327_v2  ;;  %338 = vmatpush.bf16.msra.mxu3 %v327_v2 }
   0xe   :  { %135 = vmatpush.bf16.msra.mxu0 %v326_v3  ;;  %339 = vmatpush.bf16.msra.mxu1 %v326_v3 }
   0xf   :  { %340 = vmatpush.bf16.msra.mxu2 %v326_v3  ;;  %341 = vmatpush.bf16.msra.mxu3 %v326_v3 }
  0x11   :  { %310 = vmatmul.msk.bf16.vlgmr.msra.gmra.mxu0 %vm103_vm0, %v318_v4  ;;  %312 = vmatmul.msk.bf16.vlgmr.msra.gmra.mxu1 %vm103_vm0, %v320_v5 }
  0x12   :  { %314 = vmatmul.msk.bf16.vlgmr.msra.gmra.mxu2 %vm103_vm0, %v322_v6  ;;  %316 = vmatmul.msk.bf16.vlgmr.msra.gmra.mxu3 %vm103_vm0, %v324_v7 }
  0x21   :  { %311 = vmatmul.msk.bf16.gmra.mxu0 %vm103_vm0, %v319_v8  ;;  %313 = vmatmul.msk.bf16.gmra.mxu1 %vm103_vm0, %v321_v9 }
  0x22   :  { %315 = vmatmul.msk.bf16.gmra.mxu2 %vm103_vm0, %v323_v10  ;;  %317 = vmatmul.msk.bf16.gmra.mxu3 %vm103_vm0, %v325_v11 }
  0x8e   :  { %v137_v12 = vpop.f32.mrf.mxu0  ;;  %v147_v13 = vpop.f32.mrf.mxu1 }
  0x8f   :  { %vm178_vm1 = vcmp.gt.f32.partialorder %v137_v12, 0.0  ;;  %v194_v14 = vmul.f32 0.2, %v137_v12  ;;  %vm182_vm2 = vcmp.gt.f32.partialorder %v147_v13, 0.0  ;;  %v198_v15 = vmul.f32 0.2, %v147_v13 }
  0x91   :  { %v210_v16 = vsel %vm178_vm1, %v137_v12, %v194_v14  ;;  %v214_v17 = vsel %vm182_vm2, %v147_v13, %v198_v15 }
  0x92   :  { %226 = vst [vmem:[%s489_s2] sm:$0xff] %v210_v16 }
  0x93   :  { %230 = vst [vmem:[%s489_s2 + $0x20] sm:$0xff] %v214_v17 }
  0x95   :  { %v157_v19 = vpop.f32.mrf.mxu2  ;;  %v167_v20 = vpop.f32.mrf.mxu3 }
  0x96   :  { %vm186_vm3 = vcmp.gt.f32.partialorder %v157_v19, 0.0  ;;  %v202_v21 = vmul.f32 0.2, %v157_v19  ;;  %vm190_vm4 = vcmp.gt.f32.partialorder %v167_v20, 0.0  ;;  %v206_v22 = vmul.f32 0.2, %v167_v20  ;;  %v139_v23 = vpop.f32.mrf.mxu0  ;;  %v149_v24 = vpop.f32.mrf.mxu1 }
  0x97   :  { %vm179_vm5 = vcmp.gt.f32.partialorder %v139_v23, 0.0  ;;  %v195_v25 = vmul.f32 0.2, %v139_v23  ;;  %vm183_vm6 = vcmp.gt.f32.partialorder %v149_v24, 0.0  ;;  %v199_v26 = vmul.f32 0.2, %v149_v24 }
  0x98   :  { %v218_v27 = vsel %vm186_vm3, %v157_v19, %v202_v21  ;;  %v222_v28 = vsel %vm190_vm4, %v167_v20, %v206_v22 }
  0x99   :  { %234 = vst [vmem:[%s489_s2 + $0x40] sm:$0xff] %v218_v27  ;;  %v211_v29 = vsel %vm179_vm5, %v139_v23, %v195_v25  ;;  %v215_v30 = vsel %vm183_vm6, %v149_v24, %v199_v26 }
  0x9a   :  { %238 = vst [vmem:[%s489_s2 + $0x60] sm:$0xff] %v222_v28 }
  0x9b   :  { %227 = vst [vmem:[%s489_s2 + $0x8] sm:$0xff] %v211_v29 }
  0x9c   :  { %231 = vst [vmem:[%s489_s2 + $0x28] sm:$0xff] %v215_v30 }
  0x9d   :  { %v159_v31 = vpop.f32.mrf.mxu2  ;;  %v169_v32 = vpop.f32.mrf.mxu3 }
  0x9e   :  { %vm187_vm7 = vcmp.gt.f32.partialorder %v159_v31, 0.0  ;;  %v203_v33 = vmul.f32 0.2, %v159_v31  ;;  %vm191_vm8 = vcmp.gt.f32.partialorder %v169_v32, 0.0  ;;  %v207_v34 = vmul.f32 0.2, %v169_v32  ;;  %v142_v35 = vpop.f32.mrf.mxu0  ;;  %v152_v36 = vpop.f32.mrf.mxu1 }
  0x9f   :  { %vm180_vm9 = vcmp.gt.f32.partialorder %v142_v35, 0.0  ;;  %v196_v37 = vmul.f32 0.2, %v142_v35  ;;  %vm184_vm10 = vcmp.gt.f32.partialorder %v152_v36, 0.0  ;;  %v200_v38 = vmul.f32 0.2, %v152_v36 }
  0xa0   :  { %v219_v39 = vsel %vm187_vm7, %v159_v31, %v203_v33  ;;  %v223_v40 = vsel %vm191_vm8, %v169_v32, %v207_v34 }
  0xa1   :  { %235 = vst [vmem:[%s489_s2 + $0x48] sm:$0xff] %v219_v39  ;;  %v212_v41 = vsel %vm180_vm9, %v142_v35, %v196_v37  ;;  %v216_v42 = vsel %vm184_vm10, %v152_v36, %v200_v38 }
  0xa2   :  { %239 = vst [vmem:[%s489_s2 + $0x68] sm:$0xff] %v223_v40 }
  0xa3   :  { %228 = vst [vmem:[%s489_s2 + $0x10] sm:$0xff] %v212_v41 }
  0xa4   :  { %232 = vst [vmem:[%s489_s2 + $0x30] sm:$0xff] %v216_v42 }
  0xa5   :  { %v162_v43 = vpop.f32.mrf.mxu2  ;;  %v172_v44 = vpop.f32.mrf.mxu3 }
  0xa6   :  { %vm188_vm11 = vcmp.gt.f32.partialorder %v162_v43, 0.0  ;;  %v204_v45 = vmul.f32 0.2, %v162_v43  ;;  %vm192_vm12 = vcmp.gt.f32.partialorder %v172_v44, 0.0  ;;  %v208_v46 = vmul.f32 0.2, %v172_v44  ;;  %v144_v47 = vpop.f32.mrf.mxu0  ;;  %v154_v48 = vpop.f32.mrf.mxu1 }
  0xa7   :  { %vm181_vm13 = vcmp.gt.f32.partialorder %v144_v47, 0.0  ;;  %v197_v49 = vmul.f32 0.2, %v144_v47  ;;  %vm185_vm14 = vcmp.gt.f32.partialorder %v154_v48, 0.0  ;;  %v201_v50 = vmul.f32 0.2, %v154_v48 }
  0xa8   :  { %v220_v51 = vsel %vm188_vm11, %v162_v43, %v204_v45  ;;  %v224_v52 = vsel %vm192_vm12, %v172_v44, %v208_v46 }
  0xa9   :  { %236 = vst [vmem:[%s489_s2 + $0x50] sm:$0xff] %v220_v51  ;;  %v213_v53 = vsel %vm181_vm13, %v144_v47, %v197_v49  ;;  %v217_v54 = vsel %vm185_vm14, %v154_v48, %v201_v50 }
  0xaa   :  { %240 = vst [vmem:[%s489_s2 + $0x70] sm:$0xff] %v224_v52 }
  0xab   :  { %229 = vst [vmem:[%s489_s2 + $0x18] sm:$0xff] %v213_v53 }
  0xac   :  { %233 = vst [vmem:[%s489_s2 + $0x38] sm:$0xff] %v217_v54 }
  0xad   :  { %v164_v55 = vpop.f32.mrf.mxu2  ;;  %v174_v56 = vpop.f32.mrf.mxu3 }
  0xae   :  { %vm189_vm15 = vcmp.gt.f32.partialorder %v164_v55, 0.0  ;;  %v205_v57 = vmul.f32 0.2, %v164_v55  ;;  %vm193_vm0 = vcmp.gt.f32.partialorder %v174_v56, 0.0  ;;  %v209_v58 = vmul.f32 0.2, %v174_v56 }
  0xb0   :  { %v221_v59 = vsel %vm189_vm15, %v164_v55, %v205_v57  ;;  %v225_v60 = vsel %vm193_vm0, %v174_v56, %v209_v58 }
  0xb1   :  { %237 = vst [vmem:[%s489_s2 + $0x58] sm:$0xff] %v221_v59 }
  0xb2   :  { %241 = vst [vmem:[%s489_s2 + $0x78] sm:$0xff] %v225_v60 }
  0xb3   :  { %368 = dma.done.wait [#allocation3], 32  }
  0xb4   :  { %369 = vsyncadd [#allocation3], 4294967264 }
  0xb5   :  { %261 = vsyncpa [#allocation3], 1 }

// kernel: _forward.5
= control target key start
LH: loop header
LB: loop body
LE: loop exit
PB: predicated region body
PF: predicated region fallthrough
CT: control target
= control target key end

     0   :  { %vm134_vm0 = vcmask 1040384   ;;  %s272_s1 = inlined_call_operand.vmem [shape: bf16[128,128], index: 1, kind: input, shape index: {}]   ;;  %s273_s0 = inlined_call_operand.vmem [shape: bf16[32,128], index: 0, kind: input, shape index: {}]   ;;  %s274_s2 = inlined_call_operand.vmem [shape: f32[32,128], index: 2, kind: output, shape index: {0}]   ;;  %s275_s3 = inlined_call_operand.vmem [shape: f32[1,2,128], index: 3, kind: output, shape index: {1}]  }
   0x1   :  { %v198_v0 = vld [vmem:[%s272_s1 + $0x38] sm:$0xff]  ;;  %v197_v1 = vld [vmem:[%s272_s1 + $0x30] sm:$0xff]  ;;  %v196_v2 = vld [vmem:[%s272_s1 + $0x28] sm:$0xff] }
   0x2   :  { %93 = vmatpush.bf16.msra.mxu0 %v198_v0  ;;  %199 = vmatpush.bf16.msra.mxu1 %v198_v0  ;;  %v195_v3 = vld [vmem:[%s272_s1 + $0x20] sm:$0xff]  ;;  %v194_v4 = vld [vmem:[%s272_s1 + $0x18] sm:$0xff]  ;;  %v193_v5 = vld [vmem:[%s272_s1 + $0x10] sm:$0xff] }
   0x3   :  { %v192_v6 = vld [vmem:[%s272_s1 + $0x8] sm:$0xff]  ;;  %v191_v7 = vld [vmem:[%s272_s1] sm:$0xff] }
   0x4   :  { %v189_v8 = vld [vmem:[%s273_s0] sm:$0xff]  ;;  %v190_v9 = vld [vmem:[%s273_s0 + $0x8] sm:$0xff] }
   0x6   :  { %94 = vmatpush.bf16.msra.mxu0 %v197_v1  ;;  %200 = vmatpush.bf16.msra.mxu1 %v197_v1 }
   0xa   :  { %95 = vmatpush.bf16.msra.mxu0 %v196_v2  ;;  %201 = vmatpush.bf16.msra.mxu1 %v196_v2 }
   0xe   :  { %96 = vmatpush.bf16.msra.mxu0 %v195_v3  ;;  %202 = vmatpush.bf16.msra.mxu1 %v195_v3 }
  0x12   :  { %97 = vmatpush.bf16.msra.mxu0 %v194_v4  ;;  %203 = vmatpush.bf16.msra.mxu1 %v194_v4 }
  0x16   :  { %98 = vmatpush.bf16.msra.mxu0 %v193_v5  ;;  %204 = vmatpush.bf16.msra.mxu1 %v193_v5 }
  0x1a   :  { %99 = vmatpush.bf16.msra.mxu0 %v192_v6  ;;  %205 = vmatpush.bf16.msra.mxu1 %v192_v6 }
  0x1e   :  { %100 = vmatpush.bf16.msra.mxu0 %v191_v7  ;;  %206 = vmatpush.bf16.msra.mxu1 %v191_v7 }
  0x21   :  { %101 = vmatmul.bf16.vlgmr.msra.gmra.mxu0 %v189_v8  ;;  %106 = vmatmul.bf16.vlgmr.msra.gmra.mxu1 %v190_v9 }
  0x9e   :  { %v102_v10 = vpop.f32.mrf.mxu0  ;;  %v107_v11 = vpop.f32.mrf.mxu1 }
  0x9f   :  { %137 = vst [vmem:[%s274_s2] sm:$0xff] %v102_v10  ;;  %v121_v14 = vmul.f32 %v102_v10, %v102_v10  ;;  %v123_v17 = vmul.f32 %v107_v11, %v107_v11 }
  0xa0   :  { %139 = vst [vmem:[%s274_s2 + $0x10] sm:$0xff] %v107_v11 }
  0xa6   :  { %v104_v12 = vpop.f32.mrf.mxu0  ;;  %v109_v13 = vpop.f32.mrf.mxu1 }
  0xa7   :  { %v112_v15 = vadd.f32 %v104_v12, %v102_v10  ;;  %v122_v16 = vmul.f32 %v104_v12, %v104_v12  ;;  %138 = vst [vmem:[%s274_s2 + $0x8] sm:$0xff] %v104_v12  ;;  %v124_v21 = vmul.f32 %v109_v13, %v109_v13 }
  0xa8   :  { %140 = vst [vmem:[%s274_s2 + $0x18] sm:$0xff] %v109_v13 }
  0xa9   :  { %v125_v18 = vadd.f32 %v122_v16, %v121_v14  ;;  %v113_v19 = vadd.f32 %v112_v15, %v107_v11 }
  0xab   :  { %v114_v20 = vadd.f32 %v113_v19, %v109_v13  ;;  %v126_v22 = vadd.f32 %v125_v18, %v123_v17 }
  0xad   :  { %v115_v23 = vrot.slane %v114_v20, 4  ;;  %v127_v24 = vadd.f32 %v126_v22, %v124_v21 }
  0xaf   :  { %v116_v25 = vadd.f32 %v115_v23, %v114_v20  ;;  %v128_v26 = vrot.slane %v127_v24, 4 }
  0xb1   :  { %v117_v27 = vrot.slane %v116_v25, 2  ;;  %v129_v28 = vadd.f32 %v128_v26, %v127_v24 }
  0xb3   :  { %v118_v29 = vadd.f32 %v117_v27, %v116_v25  ;;  %v130_v30 = vrot.slane %v129_v28, 2 }
  0xb5   :  { %v119_v31 = vrot.slane %v118_v29, 1  ;;  %v131_v32 = vadd.f32 %v130_v30, %v129_v28 }
  0xb7   :  { %v132_v33 = vrot.slane %v131_v32, 1  ;;  %v120_v34 = vadd.f32 %v119_v31, %v118_v29 }
  0xb9   :  { %v133_v35 = vadd.f32 %v132_v33, %v131_v32 }
  0xbb   :  { %v135_v36 = vsel %vm134_vm0, %v120_v34, %v133_v35 }
  0xbc   :  { %136 = vst [vmem:[%s275_s3] sm:$0x3] %v135_v36 }

// kernel: _forward.6
= control target key start
LH: loop header
LB: loop body
LE: loop exit
PB: predicated region body
PF: predicated region fallthrough
CT: control target
= control target key end

     0   :  { %s94_s0 = inlined_call_operand.vmem [shape: f32[32,128], index: 0, kind: input, shape index: {}]   ;;  %s95_s1 = inlined_call_operand.vmem [shape: f32[2,128], index: 1, kind: input, shape index: {}]   ;;  %s96_s2 = inlined_call_operand.vmem [shape: f32[32,128], index: 2, kind: output, shape index: {}]  }
   0x1   :  { %v11_v0 = vld [vmem:[%s94_s0] sm:$0xff]  ;;  %v12_v3 = vld [vmem:[%s94_s0 + $0x8] sm:$0xff]  ;;  %v13_v6 = vld [vmem:[%s94_s0 + $0x10] sm:$0xff] }
   0x2   :  { %v47_v1 = vld [vmem:[%s95_s1] ss:$0 sm:$0xff]  ;;  %v48_v2 = vld [vmem:[%s95_s1 + $0x1] ss:$0 sm:$0xff]  ;;  %v14_v7 = vld [vmem:[%s94_s0 + $0x18] sm:$0xff] }
   0x3   :  { %v17_v4 = vmul.f32 %v47_v1, %v11_v0  ;;  %v18_v5 = vmul.f32 %v47_v1, %v12_v3  ;;  %v19_v8 = vmul.f32 %v47_v1, %v13_v6  ;;  %v20_v9 = vmul.f32 %v47_v1, %v14_v7 }
   0x5   :  { %v23_v10 = vadd.f32 %v48_v2, %v17_v4  ;;  %v24_v11 = vadd.f32 %v48_v2, %v18_v5  ;;  %v25_v12 = vadd.f32 %v48_v2, %v19_v8  ;;  %v26_v13 = vadd.f32 %v48_v2, %v20_v9 }
   0x7   :  { %vm27_vm0 = vcmp.gt.f32.partialorder %v23_v10, 0.0  ;;  %v31_v14 = vmul.f32 0.2, %v23_v10  ;;  %vm28_vm1 = vcmp.gt.f32.partialorder %v24_v11, 0.0  ;;  %v32_v15 = vmul.f32 0.2, %v24_v11 }
   0x8   :  { %vm29_vm2 = vcmp.gt.f32.partialorder %v25_v12, 0.0  ;;  %v33_v16 = vmul.f32 0.2, %v25_v12  ;;  %vm30_vm3 = vcmp.gt.f32.partialorder %v26_v13, 0.0  ;;  %v34_v17 = vmul.f32 0.2, %v26_v13 }
   0x9   :  { %v35_v18 = vsel %vm27_vm0, %v23_v10, %v31_v14  ;;  %v36_v19 = vsel %vm28_vm1, %v24_v11, %v32_v15 }
   0xa   :  { %39 = vst [vmem:[%s96_s2] sm:$0xff] %v35_v18  ;;  %v37_v20 = vsel %vm29_vm2, %v25_v12, %v33_v16  ;;  %v38_v21 = vsel %vm30_vm3, %v26_v13, %v34_v17 }
   0xb   :  { %40 = vst [vmem:[%s96_s2 + $0x8] sm:$0xff] %v36_v19 }
   0xc   :  { %41 = vst [vmem:[%s96_s2 + $0x10] sm:$0xff] %v37_v20 }
   0xd   :  { %42 = vst [vmem:[%s96_s2 + $0x18] sm:$0xff] %v38_v21 }

// kernel: _forward.7
= control target key start
LH: loop header
LB: loop body
LE: loop exit
PB: predicated region body
PF: predicated region fallthrough
CT: control target
= control target key end

     0   :  { %vm95_vm0 = vcmask 130048   ;;  %v210_v42 = vmov 1.0   ;;  %vm190_vm1 = vcmask 261120   ;;  %s367_s1 = inlined_call_operand.vmem [shape: f32[256,16], index: 1, kind: input, shape index: {}]   ;;  %s368_s2 = inlined_call_operand.vmem [shape: f32[32,16], index: 2, kind: input, shape index: {}]   ;;  %s369_s0 = inlined_call_operand.vmem [shape: f32[8,256], index: 0, kind: input, shape index: {}]   ;;  %s370_s3 = inlined_call_operand.vmem [shape: f32[1,32], index: 3, kind: input, shape index: {}]   ;;  %s371_s4 = inlined_call_operand.vmem [shape: f32[8,32], index: 4, kind: output, shape index: {}]  }
   0x1   :  { %v34_v0 = vld [vmem:[%s367_s1 + $0x78] sm:$0xff]  ;;  %v33_v2 = vld [vmem:[%s367_s1 + $0x70] sm:$0xff]  ;;  %v32_v4 = vld [vmem:[%s367_s1 + $0x68] sm:$0xff] }
   0x2   :  { %v50_v1 = vld [vmem:[%s367_s1 + $0xf8] sm:$0xff]  ;;  %51 = vmatpush.msra.mxu0 %v34_v0  ;;  %v49_v3 = vld [vmem:[%s367_s1 + $0xf0] sm:$0xff]  ;;  %v48_v5 = vld [vmem:[%s367_s1 + $0xe8] sm:$0xff] }
   0x3   :  { %71 = vmatpush.msra.mxu1 %v50_v1  ;;  %v31_v6 = vld [vmem:[%s367_s1 + $0x60] sm:$0xff]  ;;  %v30_v8 = vld [vmem:[%s367_s1 + $0x58] sm:$0xff]  ;;  %v29_v10 = vld [vmem:[%s367_s1 + $0x50] sm:$0xff] }
   0x4   :  { %52 = vmatpush.msra.mxu0 %v33_v2  ;;  %v47_v7 = vld [vmem:[%s367_s1 + $0xe0] sm:$0xff]  ;;  %v46_v9 = vld [vmem:[%s367_s1 + $0xd8] sm:$0xff]  ;;  %v45_v11 = vld [vmem:[%s367_s1 + $0xd0] sm:$0xff] }
   0x5   :  { %72 = vmatpush.msra.mxu1 %v49_v3  ;;  %v28_v12 = vld [vmem:[%s367_s1 + $0x48] sm:$0xff]  ;;  %v94_v14 = vld [vmem:[%s368_s2 + $0x18] sm:$0xff]  ;;  %v93_v15 = vld [vmem:[%s368_s2 + $0x10] sm:$0xff] }
   0x6   :  { %53 = vmatpush.msra.mxu0 %v32_v4  ;;  %v44_v13 = vld [vmem:[%s367_s1 + $0xc8] sm:$0xff]  ;;  %v27_v16 = vld [vmem:[%s367_s1 + $0x40] sm:$0xff]  ;;  %196 = vmatpush.xpose.msk.msra.mxu2 %vm95_vm0, %v94_v14  ;;  %v138_v18 = vmul.f32 %v94_v14, %v94_v14  ;;  %v26_v19 = vld [vmem:[%s367_s1 + $0x38] sm:$0xff]  ;;  %v137_v21 = vmul.f32 %v93_v15, %v93_v15 }
   0x7   :  { %73 = vmatpush.msra.mxu1 %v48_v5  ;;  %v43_v17 = vld [vmem:[%s367_s1 + $0xc0] sm:$0xff]  ;;  %v42_v20 = vld [vmem:[%s367_s1 + $0xb8] sm:$0xff]  ;;  %v92_v22 = vld [vmem:[%s368_s2 + $0x8] sm:$0xff] }
   0x8   :  { %54 = vmatpush.msra.mxu0 %v31_v6  ;;  %201 = vmatpush.xpose.msk.msra.mxu3 %vm95_vm0, %v138_v18  ;;  %v25_v23 = vld [vmem:[%s367_s1 + $0x30] sm:$0xff]  ;;  %v24_v25 = vld [vmem:[%s367_s1 + $0x28] sm:$0xff]  ;;  %v136_v27 = vmul.f32 %v92_v22, %v92_v22  ;;  %v23_v28 = vld [vmem:[%s367_s1 + $0x20] sm:$0xff] }
   0x9   :  { %74 = vmatpush.msra.mxu1 %v47_v7  ;;  %v41_v24 = vld [vmem:[%s367_s1 + $0xb0] sm:$0xff]  ;;  %v40_v26 = vld [vmem:[%s367_s1 + $0xa8] sm:$0xff]  ;;  %v39_v29 = vld [vmem:[%s367_s1 + $0xa0] sm:$0xff] }
   0xa   :  { %55 = vmatpush.msra.mxu0 %v30_v8  ;;  %197 = vmatpush.xpose.msk.msra.mxu2 %vm95_vm0, %v93_v15  ;;  %v22_v30 = vld [vmem:[%s367_s1 + $0x18] sm:$0xff]  ;;  %v21_v32 = vld [vmem:[%s367_s1 + $0x10] sm:$0xff]  ;;  %v20_v34 = vld [vmem:[%s367_s1 + $0x8] sm:$0xff] }
   0xb   :  { %75 = vmatpush.msra.mxu1 %v46_v9  ;;  %v38_v31 = vld [vmem:[%s367_s1 + $0x98] sm:$0xff]  ;;  %v37_v33 = vld [vmem:[%s367_s1 + $0x90] sm:$0xff]  ;;  %v36_v35 = vld [vmem:[%s367_s1 + $0x88] sm:$0xff] }
   0xc   :  { %56 = vmatpush.msra.mxu0 %v29_v10  ;;  %202 = vmatpush.xpose.msk.msra.mxu3 %vm95_vm0, %v137_v21  ;;  %v19_v36 = vld [vmem:[%s367_s1] sm:$0xff]  ;;  %v18_v39 = vld [vmem:[%s369_s0 + $0x8] sm:$0xff] }
   0xd   :  { %76 = vmatpush.msra.mxu1 %v45_v11  ;;  %v35_v37 = vld [vmem:[%s367_s1 + $0x80] sm:$0xff] }
   0xe   :  { %57 = vmatpush.msra.mxu0 %v28_v12  ;;  %198 = vmatpush.xpose.msk.msra.mxu2 %vm95_vm0, %v92_v22  ;;  %v17_v38 = vld [vmem:[%s369_s0] sm:$0xff] }
   0xf   :  { %77 = vmatpush.msra.mxu1 %v44_v13  ;;  %v91_v40 = vld [vmem:[%s368_s2] sm:$0xff] }
  0x10   :  { %58 = vmatpush.msra.mxu0 %v27_v16  ;;  %203 = vmatpush.xpose.msk.msra.mxu3 %vm95_vm0, %v136_v27  ;;  %v135_v41 = vmul.f32 %v91_v40, %v91_v40  ;;  %v207_v60 = vld [vmem:[%s370_s3] ss:$0 sm:$0xff] }
  0x11   :  { %78 = vmatpush.msra.mxu1 %v43_v17 }
  0x12   :  { %59 = vmatpush.msra.mxu0 %v26_v19  ;;  %199 = vmatpush.xpose.msk.msra.mxu2 %vm95_vm0, %v91_v40 }
  0x13   :  { %79 = vmatpush.msra.mxu1 %v42_v20 }
  0x14   :  { %60 = vmatpush.msra.mxu0 %v25_v23  ;;  %204 = vmatpush.xpose.msk.msra.mxu3 %vm95_vm0, %v135_v41 }
  0x15   :  { %80 = vmatpush.msra.mxu1 %v41_v24 }
  0x16   :  { %61 = vmatpush.msra.mxu0 %v24_v25 }
  0x17   :  { %81 = vmatpush.msra.mxu1 %v40_v26  ;;  %205 = vmatmul.msk.f32.vlgmr.msra.gmra.mxu3 %vm95_vm0, %v210_v42 }
  0x18   :  { %62 = vmatpush.msra.mxu0 %v23_v28 }
  0x19   :  { %82 = vmatpush.msra.mxu1 %v39_v29 }
  0x1a   :  { %63 = vmatpush.msra.mxu0 %v22_v30 }
  0x1b   :  { %83 = vmatpush.msra.mxu1 %v38_v31 }
  0x1c   :  { %64 = vmatpush.msra.mxu0 %v21_v32 }
  0x1d   :  { %84 = vmatpush.msra.mxu1 %v37_v33 }
  0x1e   :  { %65 = vmatpush.msra.mxu0 %v20_v34 }
  0x1f   :  { %85 = vmatpush.msra.mxu1 %v36_v35 }
  0x20   :  { %66 = vmatpush.msra.mxu0 %v19_v36 }
  0x21   :  { %86 = vmatpush.msra.mxu1 %v35_v37  ;;  %67 = vmatmul.f32.vlgmr.msra.gmra.mxu0 %v17_v38 }
  0x22   :  { %87 = vmatmul.f32.vlgmr.msra.gmra.mxu1 %v18_v39 }
  0x9a   :  { %v171_v48 = vpop.f32.mrf.mxu3 }
  0x9b   :  { %v176_v51 = vperm.slane %v171_v48, 0  ;;  %v178_v54 = vmul.f32 0.05, %v171_v48 }
  0x9d   :  { %v180_v57 = vperm.slane %v178_v54, 0 }
  0x9e   :  { %v68_v43 = vpop.f32.mrf.mxu0 }
  0x9f   :  { %v88_v44 = vpop.f32.mrf.mxu1 }
  0xa0   :  { %v89_v45 = vadd.f32 %v88_v44, %v68_v43 }
  0xa2   :  { %200 = vmatmul.msk.f32.vlgmr.msra.gmra.mxu2 %vm95_vm0, %v89_v45  ;;  %v131_v46 = vmul.f32 %v89_v45, %v89_v45 }
  0xa4   :  { %v132_v47 = vsel %vm95_vm0, %v131_v46, 0.0 }
  0xa5   :  { %133 = vadd.xlane.f32.xlu0 %v132_v47 }
 0x118   :  { %v134_v52 = vpop.xlane.xlu0 %133 }
 0x125   :  { %v128_v49 = vpop.f32.mrf.mxu2 }
 0x126   :  { %v174_v50 = vmul.f32 2.0, %v128_v49 }
 0x128   :  { %v175_v53 = vsub.f32 %v134_v52, %v174_v50 }
 0x12a   :  { %v177_v55 = vadd.f32 %v176_v51, %v175_v53 }
 0x12c   :  { %v179_v56 = vmul.f32 0.2, %v177_v55 }
 0x12e   :  { %v181_v58 = vsub.f32 %v180_v57, %v179_v56 }
 0x130   :  { %v183_v59 = vmul.f32 1.442695, %v181_v58 }
 0x132   :  { %208 = vpow2.f32 %v183_v59 }
 0x138   :  { %v209_v61 = vpop.eup %208 }
 0x139   :  { %v188_v62 = vmul.f32 %v209_v61, %v207_v60 }
 0x13b   :  { %v189_v63 = vmul.f32 0.17677669, %v188_v62 }
 0x13d   :  { %191 = vst.msk [vmem:[%s371_s4] sm:$0xff] %vm190_vm1, %v189_v63 }

</bundles_post_ra>
